<compile_context>
chip_gen: v7x
topology: tpu7x:2x2x1
jax: 0.10.0
libtpu: 0.0.40
codegen_flags: <defaults>
</compile_context>

<pallas_src>
import functools

import jax
import jax.numpy as jnp
import numpy as np
from jax.experimental import pallas as pl
from jax.experimental.pallas import tpu as pltpu

_NEG_FILL = -1e30        # softmax-axis padding value (exp underflows to 0 -> inert)
_ROW_TILE_CAP = 512      # rows per tile (~85% of HBM roofline per tile-size sweeps)
_COL_TILE_CAP = 8192     # max softmax-axis tile when N has to be column-tiled


def _kd_kernel(x_ref, t_ref, out_ref,
               mx_ref, sx_ref, mt_ref, st_ref, a_ref, *, inv_temp):
    """Online-softmax KL over column tiles of the softmax (last) axis.

    Running per-row statistics (VMEM scratch, shape (tm, 1)):
      mx, sx : max / sum-exp of the student logits x
      mt, st : max / sum-exp of the teacher logits t
      a      : sum_j exp(t_j - mt) * (t_j - x_j)
    Finalized per-row KL:  a/st - (mt - mx + log st - log sx).
    """
    k = pl.program_id(1)

    @pl.when(k == 0)
    def _init():
        mx_ref[...] = jnp.full_like(mx_ref, -jnp.inf)
        mt_ref[...] = jnp.full_like(mt_ref, -jnp.inf)
        sx_ref[...] = jnp.zeros_like(sx_ref)
        st_ref[...] = jnp.zeros_like(st_ref)
        a_ref[...] = jnp.zeros_like(a_ref)

    # Keep the 1/T scale in-kernel (a wrapper-side pre-scale would just add an
    # un-hidden XLA pass over the same HBM bytes).
    x = x_ref[...].astype(jnp.float32) * inv_temp
    t = t_ref[...].astype(jnp.float32) * inv_temp

    # --- student (x): running log-sum-exp statistics --------------------------
    mx_old = mx_ref[...]
    mx_new = jnp.maximum(mx_old, jnp.max(x, axis=-1, keepdims=True))
    sx_ref[...] = sx_ref[...] * jnp.exp(mx_old - mx_new) + jnp.sum(
        jnp.exp(x - mx_new), axis=-1, keepdims=True)
    mx_ref[...] = mx_new

    # --- teacher (t): running sum-exp and weighted (t - x) sum ----------------
    mt_old = mt_ref[...]
    mt_new = jnp.maximum(mt_old, jnp.max(t, axis=-1, keepdims=True))
    rescale = jnp.exp(mt_old - mt_new)
    e = jnp.exp(t - mt_new)
    st_ref[...] = st_ref[...] * rescale + jnp.sum(e, axis=-1, keepdims=True)
    a_ref[...] = a_ref[...] * rescale + jnp.sum(e * (t - x), axis=-1,
                                                keepdims=True)
    mt_ref[...] = mt_new

    @pl.when(k == pl.num_programs(1) - 1)
    def _finalize():
        st = st_ref[...]
        sx = sx_ref[...]
        # One reciprocal per ROW (not per element); exact keeps 1e-5 tolerances.
        inv_st = pl.reciprocal(st, approx=False)
        out_ref[...] = a_ref[...] * inv_st - (
            mt_ref[...] - mx_ref[...] + jnp.log(st) - jnp.log(sx))


def _round_up(v, m):
    return (v + m - 1) // m * m


def _vmem_capacity_bytes():
    try:
        cap = getattr(pltpu.get_tpu_info(), "vmem_capacity_bytes", None)
        if cap:
            return int(cap)
    except Exception:
        pass
    return 64 * 1024 * 1024  # conservative default (v7x per-TensorCore VMEM)


def _pick_row_tile(M, cap):
    """Largest row tile <= cap (multiple of 8).  Prefers a divisor of M (avoids
    the row-pad copy) but never shrinks below cap // 2."""
    cap = max(8, min(cap, _round_up(M, 8)) // 8 * 8)
    if M % cap == 0:
        return cap
    tm = cap - 8
    while tm >= max(8, cap // 2):
        if M % tm == 0:
            return tm
        tm -= 8
    return cap  # no nearby divisor: keep the big tile and pad rows instead


def _choose_tiles(M, N, itemsize, vmem_cap):
    """VMEM-budget driven (rows, cols) block shape.

    Per block element we budget 2 inputs x 2 pipeline buffers x itemsize for
    the DMA'd inputs plus ~4 f32 temporaries for the in-kernel math.
    """
    budget = vmem_cap // 4
    per_elem = 4 * itemsize + 16
    rows_full_n = budget // (per_elem * N)
    if rows_full_n >= 8:
        # Whole softmax axis fits in one block -> single-pass softmax (Kn == 1).
        tn = N
        tm = _pick_row_tile(M, min(int(rows_full_n), _ROW_TILE_CAP))
    else:
        # Vocab-scale N: tile the softmax axis -> online softmax (Kn > 1).
        tn = max(128, (budget // (per_elem * 8)) // 128 * 128)
        tn = int(min(tn, _COL_TILE_CAP, _round_up(N, 128)))
        tm = _pick_row_tile(M, min(int(budget // (per_elem * tn)),
                                   _ROW_TILE_CAP))
    # TODO(synk): for very small N (< 128 classes) a sublane-major layout
    # (softmax axis on sublanes, rows packed across lanes) would recover the
    # lane under-utilisation; not implemented here.
    return tm, tn


def _kd_per_row_pallas(x2d, t2d, temp_factor, *, tile_rows=None, tile_cols=None):
    """Per-row sum_j q*(log q - log p) for an [M, N] slab (softmax over last axis)."""
    M, N = x2d.shape
    itemsize = max(jnp.dtype(x2d.dtype).itemsize, jnp.dtype(t2d.dtype).itemsize)
    vmem_cap = _vmem_capacity_bytes()

    tm, tn = _choose_tiles(M, N, itemsize, vmem_cap)
    if tile_rows is not None:
        tm = int(tile_rows)
    if tile_cols is not None:
        tn = int(tile_cols)

    m_tiles = -(-M // tm)
    n_tiles = -(-N // tn)
    M_pad = m_tiles * tm
    N_pad = n_tiles * tn

    if M_pad != M or N_pad != N:
        # Padding is mathematically inert:
        #   * padded rows are identical in x and t   -> row KL is exactly 0
        #   * padded columns hold a huge negative logit -> exp underflows to 0
        pad = ((0, M_pad - M), (0, N_pad - N))
        x2d = jnp.pad(x2d, pad, constant_values=_NEG_FILL)
        t2d = jnp.pad(t2d, pad, constant_values=_NEG_FILL)

    kernel = functools.partial(_kd_kernel, inv_temp=float(1.0 / temp_factor))

    out = pl.pallas_call(
        kernel,
        out_shape=jax.ShapeDtypeStruct((M_pad, 1), jnp.float32),
        grid_spec=pltpu.PrefetchScalarGridSpec(
            num_scalar_prefetch=0,
            grid=(m_tiles, n_tiles),
            in_specs=[
                pl.BlockSpec((tm, tn), lambda i, k: (i, k)),
                pl.BlockSpec((tm, tn), lambda i, k: (i, k)),
            ],
            out_specs=pl.BlockSpec((tm, 1), lambda i, k: (i, 0)),
            scratch_shapes=[pltpu.VMEM((tm, 1), jnp.float32)
                            for _ in range(5)],
        ),
        compiler_params=pltpu.CompilerParams(
            # Row tiles are independent -> megacore / 2-TC sharding on v7x;
            # the softmax (reduction) axis is sequential.
            dimension_semantics=("parallel", "arbitrary"),
            vmem_limit_bytes=int(max(32 * 1024 * 1024, vmem_cap // 2)),
        ),
    )(x2d, t2d)
    return out[:M, 0]


def kd_loss(inp, target, temp_factor, channel_wise=False, *,
            tile_rows=None, tile_cols=None):
    """JAX/Pallas equivalent of KDLoss.forward (returns a scalar)."""
    if channel_wise:
        B, C, H, W = inp.shape
        # torch: permute NCHW->NHWC, view (B, H*W, C), softmax over dim=1 (H*W).
        # Equivalent rows-of-softmax layout: flatten NCHW to (B*C, H*W).
        x2d = inp.reshape(B * C, H * W)
        t2d = target.reshape(B * C, H * W)
        batch = B
    else:
        batch = inp.shape[0]
        x2d, t2d = inp, target

    per_row_kl = _kd_per_row_pallas(x2d, t2d, temp_factor,
                                    tile_rows=tile_rows, tile_cols=tile_cols)
    # KLDivLoss(reduction='batchmean') divides by size of dim 0 (= B), then
    # KDLoss scales by temp_factor ** 2.
    return jnp.sum(per_row_kl) / jnp.float32(batch) * jnp.float32(temp_factor) ** 2


def _kd_loss_ref(inp, target, temp_factor, channel_wise=False):
    """Pure-JAX reference mirroring the PyTorch semantics exactly."""
    if channel_wise:
        B, C, H, W = inp.shape
        inp = jnp.transpose(inp, (0, 2, 3, 1)).reshape(B, H * W, C)
        target = jnp.transpose(target, (0, 2, 3, 1)).reshape(B, H * W, C)
        axis = 1
    else:
        B = inp.shape[0]
        axis = 1
    log_p = jax.nn.log_softmax(inp / temp_factor, axis=axis)
    q = jax.nn.softmax(target / temp_factor, axis=axis)
    log_q = jax.nn.log_softmax(target / temp_factor, axis=axis)
    kl = q * (log_q - log_p)
    return jnp.sum(kl) / B * temp_factor ** 2


def _check(name, got, want, rtol, atol):
    got = np.asarray(got)
    want = np.asarray(want)
    assert np.allclose(got, want, rtol=rtol, atol=atol), (name, got, want)


if __name__ == "__main__":
    key = jax.random.PRNGKey(0)
    k1, k2, k3, k4, k5, k6 = jax.random.split(key, 6)
    temp = 4.0

    # 1) channel_wise=True: NCHW conv logits -> rows = B*C, softmax over H*W.
    x_cw = jax.random.normal(k1, (2, 4, 16, 16), dtype=jnp.float32)
    t_cw = jax.random.normal(k2, (2, 4, 16, 16), dtype=jnp.float32)
    loss_cw = jax.block_until_ready(kd_loss(x_cw, t_cw, temp, channel_wise=True))
    ref_cw = jax.block_until_ready(_kd_loss_ref(x_cw, t_cw, temp, channel_wise=True))
    _check("channel_wise", loss_cw, ref_cw, rtol=2e-5, atol=2e-5)

    # 2) channel_wise=False: plain [B, num_classes] logits.
    x_fl = jax.random.normal(k3, (8, 32), dtype=jnp.float32)
    t_fl = jax.random.normal(k4, (8, 32), dtype=jnp.float32)
    loss_fl = jax.block_until_ready(kd_loss(x_fl, t_fl, temp, channel_wise=False))
    ref_fl = jax.block_until_ready(_kd_loss_ref(x_fl, t_fl, temp, channel_wise=False))
    _check("flat", loss_fl, ref_fl, rtol=2e-5, atol=2e-5)

    # 3) Exercise the online-softmax (column-tiled) path plus row/col padding:
    #    M=136 rows with 64-row tiles, N=384 with 256-wide column tiles
    #    -> grid (3, 2), inputs padded to (192, 512).
    x_big = jax.random.normal(k5, (136, 384), dtype=jnp.float32)
    t_big = jax.random.normal(k6, (136, 384), dtype=jnp.float32)
    loss_big = jax.block_until_ready(
        kd_loss(x_big, t_big, temp, channel_wise=False, tile_rows=64, tile_cols=256))
    ref_big = jax.block_until_ready(_kd_loss_ref(x_big, t_big, temp, channel_wise=False))
    _check("tiled", loss_big, ref_big, rtol=1e-4, atol=1e-5)

    # 4) bf16 inputs (halves HBM traffic on bandwidth-bound v5e/v6e); the
    #    in-kernel math stays f32, so compare against an f32-cast reference.
    x_bf = x_cw.astype(jnp.bfloat16)
    t_bf = t_cw.astype(jnp.bfloat16)
    loss_bf = jax.block_until_ready(kd_loss(x_bf, t_bf, temp, channel_wise=True))
    ref_bf = jax.block_until_ready(
        _kd_loss_ref(x_bf.astype(jnp.float32), t_bf.astype(jnp.float32), temp,
                     channel_wise=True))
    _check("bf16", loss_bf, ref_bf, rtol=1e-4, atol=1e-4)

    print("KERNEL_OK")
</pallas_src>

<mosaic_0001>
module attributes {stable_mosaic.version = 11 : i64} {
  func.func @_kd_kernel(%arg0: i32, %arg1: i32, %arg2: memref<8x256xf32, #tpu.memory_space<vmem>>, %arg3: memref<8x256xf32, #tpu.memory_space<vmem>>, %arg4: memref<8x1xf32, #tpu.memory_space<vmem>>, %arg5: memref<8x1xf32, #tpu.memory_space<vmem>>, %arg6: memref<8x1xf32, #tpu.memory_space<vmem>>, %arg7: memref<8x1xf32, #tpu.memory_space<vmem>>, %arg8: memref<8x1xf32, #tpu.memory_space<vmem>>, %arg9: memref<8x1xf32, #tpu.memory_space<vmem>>) attributes {dimension_semantics = [#tpu.dimension_semantics<parallel>, #tpu.dimension_semantics<arbitrary>], iteration_bounds = array<i64: 1, 1>, scalar_prefetch = 0 : i64, scratch_operands = 5 : i64, tpu.core_type = #tpu.core_type<tc>, window_params = [{transform_indices = @transform_0, window_bounds = array<i64: 8, 256>}, {transform_indices = @transform_1, window_bounds = array<i64: 8, 256>}, {transform_indices = @transform_2, window_bounds = array<i64: 8, 1>}]} {
    %c0_i32 = arith.constant 0 : i32
    %0 = arith.cmpi eq, %arg1, %c0_i32 : i32
    %1 = arith.extui %0 : i1 to i32
    %c0_i32_0 = arith.constant 0 : i32
    %2 = arith.cmpi ne, %1, %c0_i32_0 : i32
    scf.if %2 {
      %cst_32 = arith.constant 0xFF800000 : f32
      %52 = vector.broadcast %cst_32 : f32 to vector<8x1xf32>
      %c0_33 = arith.constant 0 : index
      %c0_34 = arith.constant 0 : index
      %53 = vector.load %arg5[%c0_33, %c0_34] : memref<8x1xf32, #tpu.memory_space<vmem>>, vector<8x1xf32>
      tpu.vector_store %arg5[%c0_33, %c0_34], %52 {strides = array<i32>} : memref<8x1xf32, #tpu.memory_space<vmem>>, vector<8x1xf32>,
      %cst_35 = arith.constant 0xFF800000 : f32
      %54 = vector.broadcast %cst_35 : f32 to vector<8x1xf32>
      %c0_36 = arith.constant 0 : index
      %c0_37 = arith.constant 0 : index
      %55 = vector.load %arg7[%c0_36, %c0_37] : memref<8x1xf32, #tpu.memory_space<vmem>>, vector<8x1xf32>
      tpu.vector_store %arg7[%c0_36, %c0_37], %54 {strides = array<i32>} : memref<8x1xf32, #tpu.memory_space<vmem>>, vector<8x1xf32>,
      %cst_38 = arith.constant 0.000000e+00 : f32
      %56 = vector.broadcast %cst_38 : f32 to vector<8x1xf32>
      %c0_39 = arith.constant 0 : index
      %c0_40 = arith.constant 0 : index
      %57 = vector.load %arg6[%c0_39, %c0_40] : memref<8x1xf32, #tpu.memory_space<vmem>>, vector<8x1xf32>
      tpu.vector_store %arg6[%c0_39, %c0_40], %56 {strides = array<i32>} : memref<8x1xf32, #tpu.memory_space<vmem>>, vector<8x1xf32>,
      %cst_41 = arith.constant 0.000000e+00 : f32
      %58 = vector.broadcast %cst_41 : f32 to vector<8x1xf32>
      %c0_42 = arith.constant 0 : index
      %c0_43 = arith.constant 0 : index
      %59 = vector.load %arg8[%c0_42, %c0_43] : memref<8x1xf32, #tpu.memory_space<vmem>>, vector<8x1xf32>
      tpu.vector_store %arg8[%c0_42, %c0_43], %58 {strides = array<i32>} : memref<8x1xf32, #tpu.memory_space<vmem>>, vector<8x1xf32>,
      %cst_44 = arith.constant 0.000000e+00 : f32
      %60 = vector.broadcast %cst_44 : f32 to vector<8x1xf32>
      %c0_45 = arith.constant 0 : index
      %c0_46 = arith.constant 0 : index
      %61 = vector.load %arg9[%c0_45, %c0_46] : memref<8x1xf32, #tpu.memory_space<vmem>>, vector<8x1xf32>
      tpu.vector_store %arg9[%c0_45, %c0_46], %60 {strides = array<i32>} : memref<8x1xf32, #tpu.memory_space<vmem>>, vector<8x1xf32>,
    } else {
    }
    %c0 = arith.constant 0 : index
    %c0_1 = arith.constant 0 : index
    %3 = vector.load %arg2[%c0, %c0_1] : memref<8x256xf32, #tpu.memory_space<vmem>>, vector<8x256xf32>
    %cst = arith.constant 2.500000e-01 : f32
    %4 = vector.broadcast %cst : f32 to vector<8x256xf32>
    %5 = arith.mulf %3, %4 : vector<8x256xf32>
    %c0_2 = arith.constant 0 : index
    %c0_3 = arith.constant 0 : index
    %6 = vector.load %arg3[%c0_2, %c0_3] : memref<8x256xf32, #tpu.memory_space<vmem>>, vector<8x256xf32>
    %cst_4 = arith.constant 2.500000e-01 : f32
    %7 = vector.broadcast %cst_4 : f32 to vector<8x256xf32>
    %8 = arith.mulf %6, %7 : vector<8x256xf32>
    %c0_5 = arith.constant 0 : index
    %c0_6 = arith.constant 0 : index
    %9 = vector.load %arg5[%c0_5, %c0_6] : memref<8x1xf32, #tpu.memory_space<vmem>>, vector<8x1xf32>
    %cst_7 = arith.constant dense<0xFF800000> : vector<8xf32>
    %10 = vector.multi_reduction <maximumf>, %5, %cst_7 [1] : vector<8x256xf32> to vector<8xf32>
    %11 = vector.shape_cast %10 : vector<8xf32> to vector<8x1xf32>
    %12 = arith.maximumf %9, %11 : vector<8x1xf32>
    %c0_8 = arith.constant 0 : index
    %c0_9 = arith.constant 0 : index
    %13 = vector.load %arg6[%c0_8, %c0_9] : memref<8x1xf32, #tpu.memory_space<vmem>>, vector<8x1xf32>
    %14 = arith.subf %9, %12 : vector<8x1xf32>
    %15 = math.exp %14 : vector<8x1xf32>
    %16 = arith.mulf %13, %15 : vector<8x1xf32>
    %17 = vector.broadcast %12 : vector<8x1xf32> to vector<8x256xf32>
    %18 = arith.subf %5, %17 : vector<8x256xf32>
    %19 = math.exp %18 : vector<8x256xf32>
    %cst_10 = arith.constant dense<0.000000e+00> : vector<8xf32>
    %20 = vector.multi_reduction <add>, %19, %cst_10 [1] : vector<8x256xf32> to vector<8xf32>
    %21 = vector.shape_cast %20 : vector<8xf32> to vector<8x1xf32>
    %22 = arith.addf %16, %21 : vector<8x1xf32>
    %c0_11 = arith.constant 0 : index
    %c0_12 = arith.constant 0 : index
    %23 = vector.load %arg6[%c0_11, %c0_12] : memref<8x1xf32, #tpu.memory_space<vmem>>, vector<8x1xf32>
    tpu.vector_store %arg6[%c0_11, %c0_12], %22 {strides = array<i32>} : memref<8x1xf32, #tpu.memory_space<vmem>>, vector<8x1xf32>,
    %c0_13 = arith.constant 0 : index
    %c0_14 = arith.constant 0 : index
    %24 = vector.load %arg5[%c0_13, %c0_14] : memref<8x1xf32, #tpu.memory_space<vmem>>, vector<8x1xf32>
    tpu.vector_store %arg5[%c0_13, %c0_14], %12 {strides = array<i32>} : memref<8x1xf32, #tpu.memory_space<vmem>>, vector<8x1xf32>,
    %c0_15 = arith.constant 0 : index
    %c0_16 = arith.constant 0 : index
    %25 = vector.load %arg7[%c0_15, %c0_16] : memref<8x1xf32, #tpu.memory_space<vmem>>, vector<8x1xf32>
    %cst_17 = arith.constant dense<0xFF800000> : vector<8xf32>
    %26 = vector.multi_reduction <maximumf>, %8, %cst_17 [1] : vector<8x256xf32> to vector<8xf32>
    %27 = vector.shape_cast %26 : vector<8xf32> to vector<8x1xf32>
    %28 = arith.maximumf %25, %27 : vector<8x1xf32>
    %29 = arith.subf %25, %28 : vector<8x1xf32>
    %30 = math.exp %29 : vector<8x1xf32>
    %31 = vector.broadcast %28 : vector<8x1xf32> to vector<8x256xf32>
    %32 = arith.subf %8, %31 : vector<8x256xf32>
    %33 = math.exp %32 : vector<8x256xf32>
    %c0_18 = arith.constant 0 : index
    %c0_19 = arith.constant 0 : index
    %34 = vector.load %arg8[%c0_18, %c0_19] : memref<8x1xf32, #tpu.memory_space<vmem>>, vector<8x1xf32>
    %35 = arith.mulf %34, %30 : vector<8x1xf32>
    %cst_20 = arith.constant dense<0.000000e+00> : vector<8xf32>
    %36 = vector.multi_reduction <add>, %33, %cst_20 [1] : vector<8x256xf32> to vector<8xf32>
    %37 = vector.shape_cast %36 : vector<8xf32> to vector<8x1xf32>
    %38 = arith.addf %35, %37 : vector<8x1xf32>
    %c0_21 = arith.constant 0 : index
    %c0_22 = arith.constant 0 : index
    %39 = vector.load %arg8[%c0_21, %c0_22] : memref<8x1xf32, #tpu.memory_space<vmem>>, vector<8x1xf32>
    tpu.vector_store %arg8[%c0_21, %c0_22], %38 {strides = array<i32>} : memref<8x1xf32, #tpu.memory_space<vmem>>, vector<8x1xf32>,
    %c0_23 = arith.constant 0 : index
    %c0_24 = arith.constant 0 : index
    %40 = vector.load %arg9[%c0_23, %c0_24] : memref<8x1xf32, #tpu.memory_space<vmem>>, vector<8x1xf32>
    %41 = arith.mulf %40, %30 : vector<8x1xf32>
    %42 = arith.subf %8, %5 : vector<8x256xf32>
    %43 = arith.mulf %33, %42 : vector<8x256xf32>
    %cst_25 = arith.constant dense<0.000000e+00> : vector<8xf32>
    %44 = vector.multi_reduction <add>, %43, %cst_25 [1] : vector<8x256xf32> to vector<8xf32>
    %45 = vector.shape_cast %44 : vector<8xf32> to vector<8x1xf32>
    %46 = arith.addf %41, %45 : vector<8x1xf32>
    %c0_26 = arith.constant 0 : index
    %c0_27 = arith.constant 0 : index
    %47 = vector.load %arg9[%c0_26, %c0_27] : memref<8x1xf32, #tpu.memory_space<vmem>>, vector<8x1xf32>
    tpu.vector_store %arg9[%c0_26, %c0_27], %46 {strides = array<i32>} : memref<8x1xf32, #tpu.memory_space<vmem>>, vector<8x1xf32>,
    %c0_28 = arith.constant 0 : index
    %c0_29 = arith.constant 0 : index
    %48 = vector.load %arg7[%c0_28, %c0_29] : memref<8x1xf32, #tpu.memory_space<vmem>>, vector<8x1xf32>
    tpu.vector_store %arg7[%c0_28, %c0_29], %28 {strides = array<i32>} : memref<8x1xf32, #tpu.memory_space<vmem>>, vector<8x1xf32>,
    %c0_i32_30 = arith.constant 0 : i32
    %49 = arith.cmpi eq, %arg1, %c0_i32_30 : i32
    %50 = arith.extui %49 : i1 to i32
    %c0_i32_31 = arith.constant 0 : i32
    %51 = arith.cmpi ne, %50, %c0_i32_31 : i32
    scf.if %51 {
      %c0_32 = arith.constant 0 : index
      %c0_33 = arith.constant 0 : index
      %52 = vector.load %arg8[%c0_32, %c0_33] : memref<8x1xf32, #tpu.memory_space<vmem>>, vector<8x1xf32>
      %c0_34 = arith.constant 0 : index
      %c0_35 = arith.constant 0 : index
      %53 = vector.load %arg6[%c0_34, %c0_35] : memref<8x1xf32, #tpu.memory_space<vmem>>, vector<8x1xf32>
      %54 = tpu.reciprocal %52 : vector<8x1xf32> -> vector<8x1xf32>
      %c0_36 = arith.constant 0 : index
      %c0_37 = arith.constant 0 : index
      %55 = vector.load %arg9[%c0_36, %c0_37] : memref<8x1xf32, #tpu.memory_space<vmem>>, vector<8x1xf32>
      %56 = arith.mulf %55, %54 : vector<8x1xf32>
      %c0_38 = arith.constant 0 : index
      %c0_39 = arith.constant 0 : index
      %57 = vector.load %arg7[%c0_38, %c0_39] : memref<8x1xf32, #tpu.memory_space<vmem>>, vector<8x1xf32>
      %c0_40 = arith.constant 0 : index
      %c0_41 = arith.constant 0 : index
      %58 = vector.load %arg5[%c0_40, %c0_41] : memref<8x1xf32, #tpu.memory_space<vmem>>, vector<8x1xf32>
      %59 = arith.subf %57, %58 : vector<8x1xf32>
      %60 = math.log %52 : vector<8x1xf32>
      %61 = arith.addf %59, %60 : vector<8x1xf32>
      %62 = math.log %53 : vector<8x1xf32>
      %63 = arith.subf %61, %62 : vector<8x1xf32>
      %64 = arith.subf %56, %63 : vector<8x1xf32>
      %c0_42 = arith.constant 0 : index
      %c0_43 = arith.constant 0 : index
      %65 = vector.load %arg4[%c0_42, %c0_43] : memref<8x1xf32, #tpu.memory_space<vmem>>, vector<8x1xf32>
      tpu.vector_store %arg4[%c0_42, %c0_43], %64 {strides = array<i32>} : memref<8x1xf32, #tpu.memory_space<vmem>>, vector<8x1xf32>,
    } else {
    }
    return
  }
  func.func @transform_0(%arg0: i32, %arg1: i32) -> (i32, i32) {
    %c0_i32 = arith.constant 0 : i32
    return %arg0, %arg1 : i32, i32
  }
  func.func @transform_1(%arg0: i32, %arg1: i32) -> (i32, i32) {
    %c0_i32 = arith.constant 0 : i32
    return %arg0, %arg1 : i32, i32
  }
  func.func @transform_2(%arg0: i32, %arg1: i32) -> (i32, i32) {
    %c0_i32 = arith.constant 0 : i32
    %c0_i32_0 = arith.constant 0 : i32
    return %arg0, %c0_i32 : i32, i32
  }
}

</mosaic_0001>

<bundles_post_ra>
// kernel: tpu_custom_call.1
= control target key start
LH: loop header
LB: loop body
LE: loop exit
PB: predicated region body
PF: predicated region fallthrough
CT: control target
= control target key end

     0   :  { %7 = vsyncpa [#allocation8], 0  ;;  %s275_s0 = inlined_call_operand.hbm [shape: f32[8,256], index: 0, kind: input, shape index: {}]   ;;  %s276_s1 = inlined_call_operand.hbm [shape: f32[8,256], index: 1, kind: input, shape index: {}]   ;;  %s277_s2 = inlined_call_operand.vmem [shape: f32[8,1], index: 2, kind: output, shape index: {}]  }
   0x1   :  { %8 = vsyncpa [#allocation10], 0  ;;  %s217_s9 = smov [#allocation7]   ;;  %s218_s11 = smov [#allocation9]  }
   0x2   :  { %s15_s10 = sshll.u32 %s217_s9, 4  ;;  %s25_s12 = sshll.u32 %s218_s11, 4  ;;  %s16_s10 = int_to_ptr.vmem [resolvable:$true] %s15_s10  ;;  %s26_s12 = int_to_ptr.vmem [resolvable:$true] %s25_s12 }
   0x3   :  { %s169_s15 = scalar_lea.hbm %s275_s0, 256 }
   0x4   :  { %p170_p0 = scmp.ne.s32.totalorder %s275_s0, %s169_s15  ;;  %p173_p1 = scmp.lt.u32.totalorder %s169_s15, %s275_s0 }
   0x6   :  { %p175_p2 = pnand %p173_p1, %p170_p0 }
   0x8   :  { %178 = shalt.err (!%p175_p2)
}
   0x9   :  { %s179_s20 = scalar_lea.vmem %s16_s10, 256  ;;  %p184_p4 = scmp.lt.s32.totalorder %s16_s10, %s16_s10 }
   0xa   :  { %p180_p3 = scmp.ne.s32.totalorder %s16_s10, %s179_s20  ;;  %p185_p5 = scmp.lt.s32.totalorder %s179_s20, %s179_s20 }
   0xc   :  { %p186_p6 = por %p185_p5, %p184_p4 }
   0xe   :  { %p187_p7 = pnand %p186_p6, %p180_p3 }
  0x10   :  { %190 = shalt.err (!%p187_p7)
}
  0x11   :  { %18 = dma.hbm_to_vmem [thread:$0]  %s275_s0, 256, %s16_s10, [#allocation8]  }
  0x12   :  { %s191_s25 = scalar_lea.hbm %s276_s1, 256 }
  0x13   :  { %p192_p8 = scmp.ne.s32.totalorder %s276_s1, %s191_s25  ;;  %p195_p9 = scmp.lt.u32.totalorder %s191_s25, %s276_s1 }
  0x15   :  { %p197_p10 = pnand %p195_p9, %p192_p8 }
  0x17   :  { %200 = shalt.err (!%p197_p10)
}
  0x18   :  { %s201_s30 = scalar_lea.vmem %s26_s12, 256  ;;  %p206_p12 = scmp.lt.s32.totalorder %s26_s12, %s26_s12 }
  0x19   :  { %p202_p11 = scmp.ne.s32.totalorder %s26_s12, %s201_s30  ;;  %p207_p13 = scmp.lt.s32.totalorder %s201_s30, %s201_s30 }
  0x1b   :  { %p208_p0 = por %p207_p13, %p206_p12 }
  0x1d   :  { %p209_p1 = pnand %p208_p0, %p202_p11 }
  0x1f   :  { %212 = shalt.err (!%p209_p1)
}
  0x20   :  { %28 = dma.hbm_to_vmem [thread:$0]  %s276_s1, 256, %s26_s12, [#allocation10]  }
  0x21   :  { %213 = dma.done.wait [#allocation8], 256  }
  0x22   :  { %214 = vsyncadd [#allocation8], 4294967040 }
  0x23   :  { %215 = dma.done.wait [#allocation10], 256  }
  0x24   :  { %216 = vsyncadd [#allocation10], 4294967040  ;;  %vm39_vm0 = vcmask 7168   ;;  %v219_v0 = vmov -inf   ;;  %v49_v1 = vld [vmem:[#allocation9] sm:$0xff]  ;;  %v50_v2 = vld [vmem:[#allocation9 + $0x8] sm:$0xff] }
  0x25   :  { %41 = vst.msk [vmem:[#allocation4] sm:$0xff] %vm39_vm0, %v219_v0  ;;  %40 = vst.msk [vmem:[#allocation2] sm:$0xff] %vm39_vm0, %v219_v0  ;;  %v45_v3 = vld [vmem:[#allocation7] sm:$0xff]  ;;  %v51_v4 = vmul.f32 0.25, %v49_v1  ;;  %v52_v5 = vmul.f32 0.25, %v50_v2  ;;  %v46_v6 = vld [vmem:[#allocation7 + $0x8] sm:$0xff] }
  0x26   :  { %v47_v7 = vmul.f32 0.25, %v45_v3  ;;  %v48_v8 = vmul.f32 0.25, %v46_v6  ;;  %v220_v11 = vmov 0   ;;  %v221_v12 = vmov 0.0  }
  0x27   :  { %v82_v9 = vmax.f32 %v51_v4, %v52_v5  ;;  %149 = vset.pattern.permute.xlu1 %v220_v11  ;;  %150 = vset.pattern.permute.xlu0 %v220_v11  ;;  %43 = vst.msk [vmem:[#allocation5] sm:$0xff] %vm39_vm0, %v221_v12  ;;  %42 = vst.msk [vmem:[#allocation3] sm:$0xff] %vm39_vm0, %v221_v12 }
  0x28   :  { %v54_v10 = vmax.f32 %v47_v7, %v48_v8  ;;  %44 = vst.msk [vmem:[#allocation6] sm:$0xff] %vm39_vm0, %v221_v12  ;;  %v109_v31 = vsub.f32 %v51_v4, %v47_v7  ;;  %v110_v32 = vsub.f32 %v52_v5, %v48_v8 }
  0x29   :  { %83 = vmax.xlane.f32.xlu0 %v82_v9 }
  0x2c   :  { %v81_v13 = vld [vmem:[#allocation4] sm:$0xff]  ;;  %v53_v16 = vld [vmem:[#allocation2] sm:$0xff] }
  0x2d   :  { %55 = vmax.xlane.f32.xlu0 %v54_v10 }
  0x2e   :  { %v100_v45 = vld [vmem:[#allocation5] sm:$0xff]  ;;  %v58_v50 = vld [vmem:[#allocation3] sm:$0xff] }
  0x2f   :  { %v107_v49 = vld [vmem:[#allocation6] sm:$0xff] }
  0xb6   :  { %v84_v14 = vpop.xlane.xlu0 %83 }
  0xb7   :  { %v85_v15 = vmax.f32 %v81_v13, %v84_v14 }
  0xb9   :  { %v86_v17 = vsub.f32 %v81_v13, %v85_v15  ;;  %118 = vst.msk [vmem:[#allocation4] sm:$0xff] %vm39_vm0, %v85_v15  ;;  %91 = vperm.xlu1 %149, %v85_v15  }
  0xba   :  { %v56_v18 = vpop.xlane.xlu0 %55 }
  0xbb   :  { %v57_v19 = vmax.f32 %v53_v16, %v56_v18  ;;  %v87_v42 = vmul.f32 1.442695, %v86_v17 }
  0xbd   :  { %v59_v20 = vsub.f32 %v53_v16, %v57_v19  ;;  %80 = vst.msk [vmem:[#allocation2] sm:$0xff] %vm39_vm0, %v57_v19  ;;  %65 = vperm.xlu1 %149, %v57_v19  }
  0xbf   :  { %v60_v43 = vmul.f32 1.442695, %v59_v20 }
  0xc0   :  { %v127_v62 = vld [vmem:[#allocation4] sm:$0xff] }
  0xc4   :  { %v128_v60 = vld [vmem:[#allocation2] sm:$0xff] }
  0xc5   :  { %v129_v1 = vsub.f32 %v127_v62, %v128_v60 }
 0x138   :  { %v92_v21 = vpop.permute.xlu1 %91 }
 0x139   :  { %v94_v22 = vsub.f32 %v51_v4, %v92_v21  ;;  %v95_v23 = vsub.f32 %v52_v5, %v92_v21 }
 0x13b   :  { %v96_v24 = vmul.f32 1.442695, %v94_v22  ;;  %v98_v25 = vmul.f32 1.442695, %v95_v23 }
 0x13c   :  { %v66_v26 = vpop.permute.xlu1 %65 }
 0x13d   :  { %151 = vpow2.f32 %v96_v24  ;;  %v68_v27 = vsub.f32 %v47_v7, %v66_v26  ;;  %v69_v28 = vsub.f32 %v48_v8, %v66_v26 }
 0x13e   :  { %153 = vpow2.f32 %v98_v25 }
 0x13f   :  { %v70_v29 = vmul.f32 1.442695, %v68_v27  ;;  %v72_v30 = vmul.f32 1.442695, %v69_v28 }
 0x141   :  { %155 = vpow2.f32 %v70_v29 }
 0x142   :  { %157 = vpow2.f32 %v72_v30 }
 0x143   :  { %159 = vpow2.f32 %v87_v42 }
 0x144   :  { %161 = vpow2.f32 %v60_v43 }
 0x147   :  { %v152_v33 = vpop.eup %151 }
 0x148   :  { %v154_v34 = vpop.eup %153  ;;  %v111_v36 = vmul.f32 %v152_v33, %v109_v31 }
 0x149   :  { %v102_v35 = vadd.f32 %v154_v34, %v152_v33  ;;  %v112_v37 = vmul.f32 %v154_v34, %v110_v32 }
 0x14b   :  { %v156_v38 = vpop.eup %155  ;;  %103 = vadd.xlane.f32.xlu0 %v102_v35  ;;  %v113_v40 = vadd.f32 %v112_v37, %v111_v36 }
 0x14c   :  { %v158_v39 = vpop.eup %157 }
 0x14d   :  { %v74_v41 = vadd.f32 %v158_v39, %v156_v38  ;;  %v160_v44 = vpop.eup %159 }
 0x14e   :  { %v101_v46 = vmul.f32 %v160_v44, %v100_v45  ;;  %v162_v47 = vpop.eup %161  ;;  %v108_v52 = vmul.f32 %v160_v44, %v107_v49 }
 0x14f   :  { %114 = vadd.xlane.f32.xlu0 %v113_v40  ;;  %75 = vadd.xlane.f32.xlu1 %v74_v41  ;;  %v62_v53 = vmul.f32 %v162_v47, %v58_v50 }
 0x1d8   :  { %v104_v48 = vpop.xlane.xlu0 %103 }
 0x1d9   :  { %v105_v51 = vadd.f32 %v104_v48, %v101_v46 }
 0x1db   :  { %106 = vst.msk [vmem:[#allocation5] sm:$0xff] %vm39_vm0, %v105_v51 }
 0x1dc   :  { %v115_v54 = vpop.xlane.xlu0 %114  ;;  %v76_v55 = vpop.xlane.xlu1 %75 }
 0x1dd   :  { %v116_v56 = vadd.f32 %v115_v54, %v108_v52  ;;  %v77_v57 = vadd.f32 %v76_v55, %v62_v53 }
 0x1df   :  { %117 = vst.msk [vmem:[#allocation6] sm:$0xff] %vm39_vm0, %v116_v56  ;;  %79 = vst.msk [vmem:[#allocation3] sm:$0xff] %vm39_vm0, %v77_v57 }
 0x1e2   :  { %v122_v58 = vld [vmem:[#allocation5] sm:$0xff] }
 0x1e3   :  { %163 = vlog2.f32 %v122_v58 }
 0x1e4   :  { %165 = vrcp.f32 %v122_v58 }
 0x1e6   :  { %v123_v59 = vld [vmem:[#allocation3] sm:$0xff]  ;;  %v125_v5 = vld [vmem:[#allocation6] sm:$0xff] }
 0x1e7   :  { %167 = vlog2.f32 %v123_v59 }
 0x1ed   :  { %v164_v61 = vpop.eup %163 }
 0x1ee   :  { %v131_v63 = vmul.f32 0.6931472, %v164_v61  ;;  %v166_v0 = vpop.eup %165 }
 0x1ef   :  { %v126_v6 = vmul.f32 %v166_v0, %v125_v5 }
 0x1f0   :  { %v132_v3 = vadd.f32 %v131_v63, %v129_v1 }
 0x1f1   :  { %v168_v2 = vpop.eup %167 }
 0x1f2   :  { %v134_v4 = vmul.f32 0.6931472, %v168_v2 }
 0x1f4   :  { %v135_v7 = vsub.f32 %v132_v3, %v134_v4 }
 0x1f6   :  { %v136_v8 = vsub.f32 %v126_v6, %v135_v7 }
 0x1f8   :  { %137 = vst.msk [vmem:[%s277_s2] sm:$0xff] %vm39_vm0, %v136_v8 }
 0x1f9   :  { %142 = vsyncpa [#allocation8], 1 }
 0x1fa   :  { %143 = vsyncpa [#allocation10], 1 }

</bundles_post_ra>
